<compile_context>
chip_gen: v5e
topology: v5e:2x2
jax: 0.10.0
libtpu: 0.0.40
codegen_flags: <defaults>
</compile_context>

<pallas_src>
import functools

import jax
import jax.numpy as jnp
from jax.experimental import pallas as pl
from jax.experimental.pallas import tpu as pltpu

# ----------------------------- config ---------------------------------------
IMAGENET_DEFAULT_MEAN = (0.485, 0.456, 0.406)
IMAGENET_DEFAULT_STD = (0.229, 0.224, 0.225)

PATCH_SIZE = 14
EMBED_DIM = 32
NUM_HEADS = 2
HEAD_DIM = EMBED_DIM // NUM_HEADS
DEPTH = 2
MLP_HIDDEN = 4 * EMBED_DIM
LN_EPS = 1e-6  # DINOv2 uses eps=1e-6


# ----------------------------- kernel helpers --------------------------------
def _gelu_tanh(x):
    c = 0.7978845608028654  # sqrt(2/pi)
    return 0.5 * x * (1.0 + jnp.tanh(c * (x + 0.044715 * x * x * x)))


def _ln(x, g, b):
    mean = jnp.mean(x, axis=-1, keepdims=True)
    var = jnp.mean((x - mean) * (x - mean), axis=-1, keepdims=True)
    return (x - mean) * jax.lax.rsqrt(var + LN_EPS) * g + b


# ----------------------------- fused ViT kernel -------------------------------
def _vit_kernel(patch_ref, pw_ref, add_ref,
                ln1g_ref, ln1b_ref, qkvw_ref, qkvb_ref, projw_ref, projb_ref,
                ln2g_ref, ln2b_ref, fc1w_ref, fc1b_ref, fc2w_ref, fc2b_ref,
                ng_ref, nb_ref, o_ref, x_vmem):
    """Whole ViT for one image, one transformer block per depth-grid step.

    grid = (N, DEPTH); this body runs for image n = program_id(0) at depth
    d = program_id(1).  The residual stream lives in x_vmem ([T, D] f32
    scratch) across depth steps.

    patch_ref : [1, P, CKK]   im2col patches of this image
    pw_ref    : [CKK, D]      bf16 patch-embed weight
    add_ref   : [T, D]        pos_embed + concat(cls_token, patch_bias)
    qkvw_ref  : [1, D, 3D]    bf16, 1/sqrt(hd) folded into the q columns
    projw_ref : [1, D, D]     bf16, LayerScale1 folded in
    fc2w_ref  : [1, MH, D]    bf16, LayerScale2 folded in
    """
    f32 = jnp.float32
    bf16 = jnp.bfloat16
    D, H, hd = EMBED_DIM, NUM_HEADS, HEAD_DIM
    d = pl.program_id(1)

    # ---- patch embed: only on the first depth step of each image -----------
    @pl.when(d == 0)
    def _embed():
        p = patch_ref[0].astype(bf16)                               # [P, CKK]
        pt = jnp.dot(p, pw_ref[...], preferred_element_type=f32)    # [P, D]
        tok = jnp.concatenate(
            [add_ref[0:1, :], pt + add_ref[1:, :]], axis=0)         # [T, D]
        x_vmem[...] = tok

    x = x_vmem[...]                                                 # [T, D] f32

    # ---- attention branch (fused QKV, heads concat'd before the proj) ------
    h = _ln(x, ln1g_ref[0].astype(f32), ln1b_ref[0].astype(f32))
    qkv = jnp.dot(h.astype(bf16), qkvw_ref[0],
                  preferred_element_type=f32) + qkvb_ref[0].astype(f32)  # [T, 3D]

    # timm/DINOv2 qkv column layout unravels as (3, H, hd): q|k|v blocks of D
    # columns, head hh at columns hh*hd:(hh+1)*hd within each block.
    heads = []
    for hh in range(H):                      # static unroll, NUM_HEADS small
        q = qkv[:, hh * hd:(hh + 1) * hd].astype(bf16)      # scale pre-folded
        k = qkv[:, D + hh * hd:D + (hh + 1) * hd].astype(bf16)
        v = qkv[:, 2 * D + hh * hd:2 * D + (hh + 1) * hd].astype(bf16)
        s = jax.lax.dot_general(q, k, (((1,), (1,)), ((), ())),
                                preferred_element_type=f32)         # [T, T]
        s = s - jnp.max(s, axis=-1, keepdims=True)
        p = jnp.exp(s)
        p = p * pl.reciprocal(jnp.sum(p, axis=-1, keepdims=True), approx=True)
        heads.append(jnp.dot(p.astype(bf16), v,
                             preferred_element_type=f32))           # [T, hd]
    attn = jnp.concatenate(heads, axis=-1)                          # [T, D]
    y = jnp.dot(attn.astype(bf16), projw_ref[0],
                preferred_element_type=f32) + projb_ref[0].astype(f32)
    x = x + y                                                       # residual 1

    # ---- MLP branch ----------------------------------------------------------
    h2 = _ln(x, ln2g_ref[0].astype(f32), ln2b_ref[0].astype(f32))
    m = jnp.dot(h2.astype(bf16), fc1w_ref[0],
                preferred_element_type=f32) + fc1b_ref[0].astype(f32)
    m = _gelu_tanh(m)
    m = jnp.dot(m.astype(bf16), fc2w_ref[0],
                preferred_element_type=f32) + fc2b_ref[0].astype(f32)
    x = x + m                                                       # residual 2

    x_vmem[...] = x

    # ---- final LayerNorm + output store on the last depth step --------------
    @pl.when(d == pl.num_programs(1) - 1)
    def _final():
        o_ref[0] = _ln(x, ng_ref[...].astype(f32),
                       nb_ref[...].astype(f32)).astype(o_ref.dtype)


def vit_forward(patches, pp):
    """patches: [N, P, CKK] im2col patches.  Returns normed tokens [N, T, D]."""
    N, P, CKK = patches.shape
    T = P + 1
    D, MH = EMBED_DIM, MLP_HIDDEN

    def rep(shape):                   # same block for every grid step
        nd = len(shape)
        return pl.BlockSpec(shape, lambda n, d, _k=nd: (0,) * _k)

    def per_image(shape):             # indexed by batch grid axis
        nd = len(shape)
        return pl.BlockSpec((1,) + shape, lambda n, d, _k=nd: (n,) + (0,) * _k)

    def per_depth(shape):             # indexed by depth grid axis
        nd = len(shape)
        return pl.BlockSpec((1,) + shape, lambda n, d, _k=nd: (d,) + (0,) * _k)

    return pl.pallas_call(
        _vit_kernel,
        out_shape=jax.ShapeDtypeStruct((N, T, D), jnp.float32),
        grid=(N, DEPTH),
        in_specs=[
            per_image((P, CKK)),                           # patches
            rep((CKK, D)),                                 # patch_w (bf16)
            rep((T, D)),                                   # add_term
            per_depth((1, D)), per_depth((1, D)),          # ln1 g/b
            per_depth((D, 3 * D)), per_depth((1, 3 * D)),  # qkv w/b
            per_depth((D, D)), per_depth((1, D)),          # proj w/b (ls1 folded)
            per_depth((1, D)), per_depth((1, D)),          # ln2 g/b
            per_depth((D, MH)), per_depth((1, MH)),        # fc1 w/b
            per_depth((MH, D)), per_depth((1, D)),         # fc2 w/b (ls2 folded)
            rep((1, D)), rep((1, D)),                      # final norm g/b
        ],
        out_specs=pl.BlockSpec((1, T, D), lambda n, d: (n, 0, 0)),
        scratch_shapes=[pltpu.VMEM((T, D), jnp.float32)],
        compiler_params=pltpu.CompilerParams(
            dimension_semantics=("parallel", "arbitrary")),
    )(patches, pp["patch_w"], pp["add_term"],
      pp["ln1_g"], pp["ln1_b"], pp["qkv_w"], pp["qkv_b"],
      pp["proj_w"], pp["proj_b"], pp["ln2_g"], pp["ln2_b"],
      pp["fc1_w"], pp["fc1_b"], pp["fc2_w"], pp["fc2_b"],
      pp["norm_g"], pp["norm_b"])


# ----------------------------- parameters ------------------------------------
def init_params(key):
    def nrm(k, shape, scale=0.02):
        return (scale * jax.random.normal(k, shape)).astype(jnp.float32)

    keys = jax.random.split(key, 8 + 10 * DEPTH)
    it = iter(keys)
    params = {
        # patch-embed conv expressed as [C*ps*ps, D] matmul weight (+ bias)
        "patch_w": nrm(next(it), (3 * PATCH_SIZE * PATCH_SIZE, EMBED_DIM)),
        "patch_b": jnp.zeros((EMBED_DIM,), jnp.float32),
        "cls_token": nrm(next(it), (1, 1, EMBED_DIM)),
        "norm_g": jnp.ones((EMBED_DIM,), jnp.float32),
        "norm_b": jnp.zeros((EMBED_DIM,), jnp.float32),
        "blocks": [],
    }
    for _ in range(DEPTH):
        params["blocks"].append({
            "ln1_g": jnp.ones((EMBED_DIM,), jnp.float32),
            "ln1_b": jnp.zeros((EMBED_DIM,), jnp.float32),
            "qkv_w": nrm(next(it), (EMBED_DIM, 3 * EMBED_DIM)),
            "qkv_b": jnp.zeros((3 * EMBED_DIM,), jnp.float32),
            "proj_w": nrm(next(it), (EMBED_DIM, EMBED_DIM)),
            "proj_b": jnp.zeros((EMBED_DIM,), jnp.float32),
            # LayerScale (DINOv2 inits at 1e-5; 1.0 here so the toy model
            # exercises both branches meaningfully — folded at prep time)
            "ls1": jnp.ones((EMBED_DIM,), jnp.float32),
            "ls2": jnp.ones((EMBED_DIM,), jnp.float32),
            "ln2_g": jnp.ones((EMBED_DIM,), jnp.float32),
            "ln2_b": jnp.zeros((EMBED_DIM,), jnp.float32),
            "fc1_w": nrm(next(it), (EMBED_DIM, MLP_HIDDEN)),
            "fc1_b": jnp.zeros((MLP_HIDDEN,), jnp.float32),
            "fc2_w": nrm(next(it), (MLP_HIDDEN, EMBED_DIM)),
            "fc2_b": jnp.zeros((EMBED_DIM,), jnp.float32),
        })
    return params


def make_pos_embed(key, num_tokens):
    return (0.02 * jax.random.normal(key, (1, num_tokens, EMBED_DIM))).astype(jnp.float32)


def prepare_params(params, pos_embed):
    """One-time parameter prep (outside the forward path / jit).

    Stacks per-block weights along a DEPTH axis, folds the attention scale
    into the q columns of qkv, folds LayerScale into proj/fc2, folds cls
    token + patch bias + pos embed into one additive term, and stores all
    matmul weights as bf16 (halves weight DMA bytes).
    """
    D, hd = EMBED_DIM, HEAD_DIM
    bf16, f32 = jnp.bfloat16, jnp.float32
    blocks = params["blocks"]

    def stack(name):
        return jnp.stack([jnp.asarray(b[name], f32) for b in blocks], axis=0)

    # fold 1/sqrt(hd) into the q part (first D output columns of qkv)
    scale = 1.0 / (hd ** 0.5)
    qscale = jnp.concatenate([jnp.full((D,), scale, f32),
                              jnp.ones((2 * D,), f32)])
    qkv_w = stack("qkv_w") * qscale[None, None, :]          # [L, D, 3D]
    qkv_b = stack("qkv_b") * qscale[None, :]                # [L, 3D]

    # fold LayerScale into the branch-output projections (y = ls*(xW+b))
    ls1, ls2 = stack("ls1"), stack("ls2")                   # [L, D]
    proj_w = stack("proj_w") * ls1[:, None, :]
    proj_b = stack("proj_b") * ls1
    fc2_w = stack("fc2_w") * ls2[:, None, :]
    fc2_b = stack("fc2_b") * ls2

    # cls token + patch-embed bias + positional embedding in one [T, D] term
    P = pos_embed.shape[1] - 1
    add_term = pos_embed[0] + jnp.concatenate(
        [params["cls_token"].reshape(1, D),
         jnp.broadcast_to(params["patch_b"].reshape(1, D), (P, D))], axis=0)

    return {
        "patch_w": params["patch_w"].astype(bf16),
        "add_term": add_term.astype(f32),
        "ln1_g": stack("ln1_g")[:, None, :],
        "ln1_b": stack("ln1_b")[:, None, :],
        "qkv_w": qkv_w.astype(bf16),
        "qkv_b": qkv_b[:, None, :],
        "proj_w": proj_w.astype(bf16),
        "proj_b": proj_b[:, None, :],
        "ln2_g": stack("ln2_g")[:, None, :],
        "ln2_b": stack("ln2_b")[:, None, :],
        "fc1_w": stack("fc1_w").astype(bf16),
        "fc1_b": stack("fc1_b")[:, None, :],
        "fc2_w": fc2_w.astype(bf16),
        "fc2_b": fc2_b[:, None, :],
        "norm_g": params["norm_g"].reshape(1, D),
        "norm_b": params["norm_b"].reshape(1, D),
    }


# ----------------------------- preprocessing ---------------------------------
def center_pad(x, multiple=PATCH_SIZE):
    """CenterPadding on the last two (spatial) dims of NCHW input."""
    N, C, H, W = x.shape

    def pads(size):
        new = -(-size // multiple) * multiple
        p = new - size
        return (p // 2, p - p // 2)

    ph, pw = pads(H), pads(W)
    return jnp.pad(x, ((0, 0), (0, 0), ph, pw))


def normalize(x):
    mean = jnp.asarray(IMAGENET_DEFAULT_MEAN, jnp.float32).reshape(1, 3, 1, 1)
    std = jnp.asarray(IMAGENET_DEFAULT_STD, jnp.float32).reshape(1, 3, 1, 1)
    return (x - mean) / std


# ----------------------------- model forward ---------------------------------
def dino_feature_extractor_forward(images, prepped):
    """images: [N, 3, H, W] float32 in [0, 1] (post-ToTensor).

    Returns (cls_tokens [N, D], patch_tokens [N, h, w, D]) — the
    DinoFeatureExtractor output (patch tokens already rearranged
    '(h w) d -> h w d').
    """
    x = center_pad(normalize(images))            # transform (minus PIL resize)
    N, C, H, W = x.shape
    ph, pw = H // PATCH_SIZE, W // PATCH_SIZE
    P = ph * pw
    D = EMBED_DIM

    # patch embed Conv2d(C, D, k=14, s=14) as im2col + matmul inside the kernel
    patches = x.reshape(N, C, ph, PATCH_SIZE, pw, PATCH_SIZE)
    patches = patches.transpose(0, 2, 4, 1, 3, 5)             # N, ph, pw, C, kh, kw
    patches = patches.reshape(N, P, C * PATCH_SIZE * PATCH_SIZE)

    # one fused pallas_call: embed -> DEPTH blocks -> final LN
    xn = vit_forward(patches, prepped)                        # [N, T, D]

    cls_tokens = xn[:, 0]                                     # x_norm_clstoken
    patch_tokens = xn[:, 1:].reshape(N, ph, pw, D)            # 'n (h w) d -> n h w d'
    return cls_tokens, patch_tokens


# ----------------------------- main ------------------------------------------
if __name__ == "__main__":
    key = jax.random.PRNGKey(0)
    k_img, k_par, k_pos = jax.random.split(key, 3)

    # batch=2, channels=3, spatial 28x28 -> 2x2 patch grid with patch_size=14
    images = jax.random.uniform(k_img, (2, 3, 28, 28), dtype=jnp.float32)

    params = init_params(k_par)
    num_tokens = 1 + (28 // PATCH_SIZE) * (28 // PATCH_SIZE)
    pos_embed = make_pos_embed(k_pos, num_tokens)
    prepped = prepare_params(params, pos_embed)   # one-time prep, outside jit

    fwd = jax.jit(dino_feature_extractor_forward)
    cls_tokens, patch_tokens = fwd(images, prepped)
    jax.block_until_ready((cls_tokens, patch_tokens))

    assert cls_tokens.shape == (2, EMBED_DIM)
    assert patch_tokens.shape == (2, 2, 2, EMBED_DIM)
    assert bool(jnp.all(jnp.isfinite(cls_tokens))) and bool(jnp.all(jnp.isfinite(patch_tokens)))
    print("KERNEL_OK")
</pallas_src>

<mosaic_0001>
module attributes {stable_mosaic.version = 11 : i64} {
  func.func @_vit_kernel(%arg0: i32, %arg1: i32, %arg2: memref<1x4x588xf32, #tpu.memory_space<vmem>>, %arg3: memref<588x32xbf16, #tpu.memory_space<vmem>>, %arg4: memref<5x32xf32, #tpu.memory_space<vmem>>, %arg5: memref<1x1x32xf32, #tpu.memory_space<vmem>>, %arg6: memref<1x1x32xf32, #tpu.memory_space<vmem>>, %arg7: memref<1x32x96xbf16, #tpu.memory_space<vmem>>, %arg8: memref<1x1x96xf32, #tpu.memory_space<vmem>>, %arg9: memref<1x32x32xbf16, #tpu.memory_space<vmem>>, %arg10: memref<1x1x32xf32, #tpu.memory_space<vmem>>, %arg11: memref<1x1x32xf32, #tpu.memory_space<vmem>>, %arg12: memref<1x1x32xf32, #tpu.memory_space<vmem>>, %arg13: memref<1x32x128xbf16, #tpu.memory_space<vmem>>, %arg14: memref<1x1x128xf32, #tpu.memory_space<vmem>>, %arg15: memref<1x128x32xbf16, #tpu.memory_space<vmem>>, %arg16: memref<1x1x32xf32, #tpu.memory_space<vmem>>, %arg17: memref<1x32xf32, #tpu.memory_space<vmem>>, %arg18: memref<1x32xf32, #tpu.memory_space<vmem>>, %arg19: memref<1x5x32xf32, #tpu.memory_space<vmem>>, %arg20: memref<5x32xf32, #tpu.memory_space<vmem>>) attributes {dimension_semantics = [#tpu.dimension_semantics<parallel>, #tpu.dimension_semantics<arbitrary>], iteration_bounds = array<i64: 2, 2>, scalar_prefetch = 0 : i64, scratch_operands = 1 : i64, tpu.core_type = #tpu.core_type<tc>, window_params = [{transform_indices = @transform_0, window_bounds = array<i64: 1, 4, 588>}, {pipeline_mode = #tpu.pipeline_mode<synchronous>, transform_indices = @transform_1, window_bounds = array<i64: 588, 32>}, {pipeline_mode = #tpu.pipeline_mode<synchronous>, transform_indices = @transform_2, window_bounds = array<i64: 5, 32>}, {transform_indices = @transform_3, window_bounds = array<i64: 1, 1, 32>}, {transform_indices = @transform_4, window_bounds = array<i64: 1, 1, 32>}, {transform_indices = @transform_5, window_bounds = array<i64: 1, 32, 96>}, {transform_indices = @transform_6, window_bounds = array<i64: 1, 1, 96>}, {transform_indices = @transform_7, window_bounds = array<i64: 1, 32, 32>}, {transform_indices = @transform_8, window_bounds = array<i64: 1, 1, 32>}, {transform_indices = @transform_9, window_bounds = array<i64: 1, 1, 32>}, {transform_indices = @transform_10, window_bounds = array<i64: 1, 1, 32>}, {transform_indices = @transform_11, window_bounds = array<i64: 1, 32, 128>}, {transform_indices = @transform_12, window_bounds = array<i64: 1, 1, 128>}, {transform_indices = @transform_13, window_bounds = array<i64: 1, 128, 32>}, {transform_indices = @transform_14, window_bounds = array<i64: 1, 1, 32>}, {pipeline_mode = #tpu.pipeline_mode<synchronous>, transform_indices = @transform_15, window_bounds = array<i64: 1, 32>}, {pipeline_mode = #tpu.pipeline_mode<synchronous>, transform_indices = @transform_16, window_bounds = array<i64: 1, 32>}, {transform_indices = @transform_17, window_bounds = array<i64: 1, 5, 32>}]} {
    %c0_i32 = arith.constant 0 : i32
    %0 = arith.cmpi eq, %arg1, %c0_i32 : i32
    %1 = arith.extui %0 : i1 to i32
    %c0_i32_0 = arith.constant 0 : i32
    %2 = arith.cmpi ne, %1, %c0_i32_0 : i32
    scf.if %2 {
      %c0_66 = arith.constant 0 : index
      %c0_67 = arith.constant 0 : index
      %c0_68 = arith.constant 0 : index
      %150 = vector.load %arg2[%c0_66, %c0_67, %c0_68] : memref<1x4x588xf32, #tpu.memory_space<vmem>>, vector<1x4x588xf32>
      %151 = vector.shape_cast %150 : vector<1x4x588xf32> to vector<4x588xf32>
      %152 = arith.truncf %151 : vector<4x588xf32> to vector<4x588xbf16>
      %c0_69 = arith.constant 0 : index
      %c0_70 = arith.constant 0 : index
      %153 = vector.load %arg3[%c0_69, %c0_70] : memref<588x32xbf16, #tpu.memory_space<vmem>>, vector<588x32xbf16>
      %cst_71 = arith.constant dense<0.000000e+00> : vector<4x32xf32>
      %154 = tpu.matmul %152, %153, %cst_71 {dimension_numbers = #tpu.dot_dimension_numbers<[1], [0], [0], [1], [0, 0, 1, 1], [], []>} : vector<4x588xbf16>, vector<588x32xbf16>, vector<4x32xf32> -> vector<4x32xf32>
      %c0_72 = arith.constant 0 : index
      %c0_73 = arith.constant 0 : index
      %155 = vector.load %arg4[%c0_72, %c0_73] : memref<5x32xf32, #tpu.memory_space<vmem>>, vector<1x32xf32>
      %c1 = arith.constant 1 : index
      %c0_74 = arith.constant 0 : index
      %156 = vector.load %arg4[%c1, %c0_74] : memref<5x32xf32, #tpu.memory_space<vmem>>, vector<4x32xf32>
      %157 = arith.addf %154, %156 : vector<4x32xf32>
      %158 = tpu.concatenate %155, %157 in 0 : vector<1x32xf32>, vector<4x32xf32> -> vector<5x32xf32>
      %c0_75 = arith.constant 0 : index
      %c0_76 = arith.constant 0 : index
      %159 = vector.load %arg20[%c0_75, %c0_76] : memref<5x32xf32, #tpu.memory_space<vmem>>, vector<5x32xf32>
      tpu.vector_store %arg20[%c0_75, %c0_76], %158 {strides = array<i32>} : memref<5x32xf32, #tpu.memory_space<vmem>>, vector<5x32xf32>,
    } else {
    }
    %c0 = arith.constant 0 : index
    %c0_1 = arith.constant 0 : index
    %3 = vector.load %arg20[%c0, %c0_1] : memref<5x32xf32, #tpu.memory_space<vmem>>, vector<5x32xf32>
    %c0_2 = arith.constant 0 : index
    %c0_3 = arith.constant 0 : index
    %c0_4 = arith.constant 0 : index
    %4 = vector.load %arg5[%c0_2, %c0_3, %c0_4] : memref<1x1x32xf32, #tpu.memory_space<vmem>>, vector<1x1x32xf32>
    %5 = vector.shape_cast %4 : vector<1x1x32xf32> to vector<1x32xf32>
    %c0_5 = arith.constant 0 : index
    %c0_6 = arith.constant 0 : index
    %c0_7 = arith.constant 0 : index
    %6 = vector.load %arg6[%c0_5, %c0_6, %c0_7] : memref<1x1x32xf32, #tpu.memory_space<vmem>>, vector<1x1x32xf32>
    %7 = vector.shape_cast %6 : vector<1x1x32xf32> to vector<1x32xf32>
    %cst = arith.constant dense<0.000000e+00> : vector<5xf32>
    %8 = vector.multi_reduction <add>, %3, %cst [1] : vector<5x32xf32> to vector<5xf32>
    %9 = vector.shape_cast %8 : vector<5xf32> to vector<5x1xf32>
    %cst_8 = arith.constant 3.200000e+01 : f32
    %10 = vector.broadcast %cst_8 : f32 to vector<5x1xf32>
    %11 = arith.divf %9, %10 : vector<5x1xf32>
    %12 = vector.broadcast %11 : vector<5x1xf32> to vector<5x32xf32>
    %13 = arith.subf %3, %12 : vector<5x32xf32>
    %14 = vector.broadcast %11 : vector<5x1xf32> to vector<5x32xf32>
    %15 = arith.subf %3, %14 : vector<5x32xf32>
    %16 = arith.mulf %13, %15 : vector<5x32xf32>
    %cst_9 = arith.constant dense<0.000000e+00> : vector<5xf32>
    %17 = vector.multi_reduction <add>, %16, %cst_9 [1] : vector<5x32xf32> to vector<5xf32>
    %18 = vector.shape_cast %17 : vector<5xf32> to vector<5x1xf32>
    %cst_10 = arith.constant 3.200000e+01 : f32
    %19 = vector.broadcast %cst_10 : f32 to vector<5x1xf32>
    %20 = arith.divf %18, %19 : vector<5x1xf32>
    %21 = vector.broadcast %11 : vector<5x1xf32> to vector<5x32xf32>
    %22 = arith.subf %3, %21 : vector<5x32xf32>
    %cst_11 = arith.constant 9.99999997E-7 : f32
    %23 = vector.broadcast %cst_11 : f32 to vector<5x1xf32>
    %24 = arith.addf %20, %23 : vector<5x1xf32>
    %25 = math.rsqrt %24 : vector<5x1xf32>
    %26 = vector.broadcast %25 : vector<5x1xf32> to vector<5x32xf32>
    %27 = arith.mulf %22, %26 : vector<5x32xf32>
    %28 = vector.broadcast %5 : vector<1x32xf32> to vector<5x32xf32>
    %29 = arith.mulf %27, %28 : vector<5x32xf32>
    %30 = vector.broadcast %7 : vector<1x32xf32> to vector<5x32xf32>
    %31 = arith.addf %29, %30 : vector<5x32xf32>
    %32 = arith.truncf %31 : vector<5x32xf32> to vector<5x32xbf16>
    %c0_12 = arith.constant 0 : index
    %c0_13 = arith.constant 0 : index
    %c0_14 = arith.constant 0 : index
    %33 = vector.load %arg7[%c0_12, %c0_13, %c0_14] : memref<1x32x96xbf16, #tpu.memory_space<vmem>>, vector<1x32x96xbf16>
    %34 = vector.shape_cast %33 : vector<1x32x96xbf16> to vector<32x96xbf16>
    %cst_15 = arith.constant dense<0.000000e+00> : vector<5x96xf32>
    %35 = tpu.matmul %32, %34, %cst_15 {dimension_numbers = #tpu.dot_dimension_numbers<[1], [0], [0], [1], [0, 0, 1, 1], [], []>} : vector<5x32xbf16>, vector<32x96xbf16>, vector<5x96xf32> -> vector<5x96xf32>
    %c0_16 = arith.constant 0 : index
    %c0_17 = arith.constant 0 : index
    %c0_18 = arith.constant 0 : index
    %36 = vector.load %arg8[%c0_16, %c0_17, %c0_18] : memref<1x1x96xf32, #tpu.memory_space<vmem>>, vector<1x1x96xf32>
    %37 = vector.shape_cast %36 : vector<1x1x96xf32> to vector<1x96xf32>
    %38 = vector.broadcast %37 : vector<1x96xf32> to vector<5x96xf32>
    %39 = arith.addf %35, %38 : vector<5x96xf32>
    %40 = vector.extract_strided_slice %39 {offsets = [0, 0], sizes = [5, 16], strides = [1, 1]} : vector<5x96xf32> to vector<5x16xf32>
    %41 = arith.truncf %40 : vector<5x16xf32> to vector<5x16xbf16>
    %42 = vector.extract_strided_slice %39 {offsets = [0, 32], sizes = [5, 16], strides = [1, 1]} : vector<5x96xf32> to vector<5x16xf32>
    %43 = arith.truncf %42 : vector<5x16xf32> to vector<5x16xbf16>
    %44 = vector.extract_strided_slice %39 {offsets = [0, 64], sizes = [5, 16], strides = [1, 1]} : vector<5x96xf32> to vector<5x16xf32>
    %45 = arith.truncf %44 : vector<5x16xf32> to vector<5x16xbf16>
    %cst_19 = arith.constant dense<0.000000e+00> : vector<5x5xf32>
    %46 = tpu.matmul %41, %43, %cst_19 {dimension_numbers = #tpu.dot_dimension_numbers<[1], [1], [0], [0], [0, 0, 1, 0], [], []>} : vector<5x16xbf16>, vector<5x16xbf16>, vector<5x5xf32> -> vector<5x5xf32>
    %cst_20 = arith.constant dense<0xFF800000> : vector<5xf32>
    %47 = vector.multi_reduction <maximumf>, %46, %cst_20 [1] : vector<5x5xf32> to vector<5xf32>
    %48 = vector.shape_cast %47 : vector<5xf32> to vector<5x1xf32>
    %49 = vector.broadcast %48 : vector<5x1xf32> to vector<5x5xf32>
    %50 = arith.subf %46, %49 : vector<5x5xf32>
    %51 = math.exp %50 : vector<5x5xf32>
    %cst_21 = arith.constant dense<0.000000e+00> : vector<5xf32>
    %52 = vector.multi_reduction <add>, %51, %cst_21 [1] : vector<5x5xf32> to vector<5xf32>
    %53 = vector.shape_cast %52 : vector<5xf32> to vector<5x1xf32>
    %54 = tpu.reciprocal %53 {approx = true} : vector<5x1xf32> -> vector<5x1xf32>
    %55 = vector.broadcast %54 : vector<5x1xf32> to vector<5x5xf32>
    %56 = arith.mulf %51, %55 : vector<5x5xf32>
    %57 = arith.truncf %56 : vector<5x5xf32> to vector<5x5xbf16>
    %cst_22 = arith.constant dense<0.000000e+00> : vector<5x16xf32>
    %58 = tpu.matmul %57, %45, %cst_22 {dimension_numbers = #tpu.dot_dimension_numbers<[1], [0], [0], [1], [0, 0, 1, 1], [], []>} : vector<5x5xbf16>, vector<5x16xbf16>, vector<5x16xf32> -> vector<5x16xf32>
    %59 = vector.extract_strided_slice %39 {offsets = [0, 16], sizes = [5, 16], strides = [1, 1]} : vector<5x96xf32> to vector<5x16xf32>
    %60 = arith.truncf %59 : vector<5x16xf32> to vector<5x16xbf16>
    %61 = vector.extract_strided_slice %39 {offsets = [0, 48], sizes = [5, 16], strides = [1, 1]} : vector<5x96xf32> to vector<5x16xf32>
    %62 = arith.truncf %61 : vector<5x16xf32> to vector<5x16xbf16>
    %63 = vector.extract_strided_slice %39 {offsets = [0, 80], sizes = [5, 16], strides = [1, 1]} : vector<5x96xf32> to vector<5x16xf32>
    %64 = arith.truncf %63 : vector<5x16xf32> to vector<5x16xbf16>
    %cst_23 = arith.constant dense<0.000000e+00> : vector<5x5xf32>
    %65 = tpu.matmul %60, %62, %cst_23 {dimension_numbers = #tpu.dot_dimension_numbers<[1], [1], [0], [0], [0, 0, 1, 0], [], []>} : vector<5x16xbf16>, vector<5x16xbf16>, vector<5x5xf32> -> vector<5x5xf32>
    %cst_24 = arith.constant dense<0xFF800000> : vector<5xf32>
    %66 = vector.multi_reduction <maximumf>, %65, %cst_24 [1] : vector<5x5xf32> to vector<5xf32>
    %67 = vector.shape_cast %66 : vector<5xf32> to vector<5x1xf32>
    %68 = vector.broadcast %67 : vector<5x1xf32> to vector<5x5xf32>
    %69 = arith.subf %65, %68 : vector<5x5xf32>
    %70 = math.exp %69 : vector<5x5xf32>
    %cst_25 = arith.constant dense<0.000000e+00> : vector<5xf32>
    %71 = vector.multi_reduction <add>, %70, %cst_25 [1] : vector<5x5xf32> to vector<5xf32>
    %72 = vector.shape_cast %71 : vector<5xf32> to vector<5x1xf32>
    %73 = tpu.reciprocal %72 {approx = true} : vector<5x1xf32> -> vector<5x1xf32>
    %74 = vector.broadcast %73 : vector<5x1xf32> to vector<5x5xf32>
    %75 = arith.mulf %70, %74 : vector<5x5xf32>
    %76 = arith.truncf %75 : vector<5x5xf32> to vector<5x5xbf16>
    %cst_26 = arith.constant dense<0.000000e+00> : vector<5x16xf32>
    %77 = tpu.matmul %76, %64, %cst_26 {dimension_numbers = #tpu.dot_dimension_numbers<[1], [0], [0], [1], [0, 0, 1, 1], [], []>} : vector<5x5xbf16>, vector<5x16xbf16>, vector<5x16xf32> -> vector<5x16xf32>
    %78 = tpu.concatenate %58, %77 in 1 : vector<5x16xf32>, vector<5x16xf32> -> vector<5x32xf32>
    %79 = arith.truncf %78 : vector<5x32xf32> to vector<5x32xbf16>
    %c0_27 = arith.constant 0 : index
    %c0_28 = arith.constant 0 : index
    %c0_29 = arith.constant 0 : index
    %80 = vector.load %arg9[%c0_27, %c0_28, %c0_29] : memref<1x32x32xbf16, #tpu.memory_space<vmem>>, vector<1x32x32xbf16>
    %81 = vector.shape_cast %80 : vector<1x32x32xbf16> to vector<32x32xbf16>
    %cst_30 = arith.constant dense<0.000000e+00> : vector<5x32xf32>
    %82 = tpu.matmul %79, %81, %cst_30 {dimension_numbers = #tpu.dot_dimension_numbers<[1], [0], [0], [1], [0, 0, 1, 1], [], []>} : vector<5x32xbf16>, vector<32x32xbf16>, vector<5x32xf32> -> vector<5x32xf32>
    %c0_31 = arith.constant 0 : index
    %c0_32 = arith.constant 0 : index
    %c0_33 = arith.constant 0 : index
    %83 = vector.load %arg10[%c0_31, %c0_32, %c0_33] : memref<1x1x32xf32, #tpu.memory_space<vmem>>, vector<1x1x32xf32>
    %84 = vector.shape_cast %83 : vector<1x1x32xf32> to vector<1x32xf32>
    %85 = vector.broadcast %84 : vector<1x32xf32> to vector<5x32xf32>
    %86 = arith.addf %82, %85 : vector<5x32xf32>
    %87 = arith.addf %3, %86 : vector<5x32xf32>
    %c0_34 = arith.constant 0 : index
    %c0_35 = arith.constant 0 : index
    %c0_36 = arith.constant 0 : index
    %88 = vector.load %arg11[%c0_34, %c0_35, %c0_36] : memref<1x1x32xf32, #tpu.memory_space<vmem>>, vector<1x1x32xf32>
    %89 = vector.shape_cast %88 : vector<1x1x32xf32> to vector<1x32xf32>
    %c0_37 = arith.constant 0 : index
    %c0_38 = arith.constant 0 : index
    %c0_39 = arith.constant 0 : index
    %90 = vector.load %arg12[%c0_37, %c0_38, %c0_39] : memref<1x1x32xf32, #tpu.memory_space<vmem>>, vector<1x1x32xf32>
    %91 = vector.shape_cast %90 : vector<1x1x32xf32> to vector<1x32xf32>
    %cst_40 = arith.constant dense<0.000000e+00> : vector<5xf32>
    %92 = vector.multi_reduction <add>, %87, %cst_40 [1] : vector<5x32xf32> to vector<5xf32>
    %93 = vector.shape_cast %92 : vector<5xf32> to vector<5x1xf32>
    %cst_41 = arith.constant 3.200000e+01 : f32
    %94 = vector.broadcast %cst_41 : f32 to vector<5x1xf32>
    %95 = arith.divf %93, %94 : vector<5x1xf32>
    %96 = vector.broadcast %95 : vector<5x1xf32> to vector<5x32xf32>
    %97 = arith.subf %87, %96 : vector<5x32xf32>
    %98 = vector.broadcast %95 : vector<5x1xf32> to vector<5x32xf32>
    %99 = arith.subf %87, %98 : vector<5x32xf32>
    %100 = arith.mulf %97, %99 : vector<5x32xf32>
    %cst_42 = arith.constant dense<0.000000e+00> : vector<5xf32>
    %101 = vector.multi_reduction <add>, %100, %cst_42 [1] : vector<5x32xf32> to vector<5xf32>
    %102 = vector.shape_cast %101 : vector<5xf32> to vector<5x1xf32>
    %cst_43 = arith.constant 3.200000e+01 : f32
    %103 = vector.broadcast %cst_43 : f32 to vector<5x1xf32>
    %104 = arith.divf %102, %103 : vector<5x1xf32>
    %105 = vector.broadcast %95 : vector<5x1xf32> to vector<5x32xf32>
    %106 = arith.subf %87, %105 : vector<5x32xf32>
    %cst_44 = arith.constant 9.99999997E-7 : f32
    %107 = vector.broadcast %cst_44 : f32 to vector<5x1xf32>
    %108 = arith.addf %104, %107 : vector<5x1xf32>
    %109 = math.rsqrt %108 : vector<5x1xf32>
    %110 = vector.broadcast %109 : vector<5x1xf32> to vector<5x32xf32>
    %111 = arith.mulf %106, %110 : vector<5x32xf32>
    %112 = vector.broadcast %89 : vector<1x32xf32> to vector<5x32xf32>
    %113 = arith.mulf %111, %112 : vector<5x32xf32>
    %114 = vector.broadcast %91 : vector<1x32xf32> to vector<5x32xf32>
    %115 = arith.addf %113, %114 : vector<5x32xf32>
    %116 = arith.truncf %115 : vector<5x32xf32> to vector<5x32xbf16>
    %c0_45 = arith.constant 0 : index
    %c0_46 = arith.constant 0 : index
    %c0_47 = arith.constant 0 : index
    %117 = vector.load %arg13[%c0_45, %c0_46, %c0_47] : memref<1x32x128xbf16, #tpu.memory_space<vmem>>, vector<1x32x128xbf16>
    %118 = vector.shape_cast %117 : vector<1x32x128xbf16> to vector<32x128xbf16>
    %cst_48 = arith.constant dense<0.000000e+00> : vector<5x128xf32>
    %119 = tpu.matmul %116, %118, %cst_48 {dimension_numbers = #tpu.dot_dimension_numbers<[1], [0], [0], [1], [0, 0, 1, 1], [], []>} : vector<5x32xbf16>, vector<32x128xbf16>, vector<5x128xf32> -> vector<5x128xf32>
    %c0_49 = arith.constant 0 : index
    %c0_50 = arith.constant 0 : index
    %c0_51 = arith.constant 0 : index
    %120 = vector.load %arg14[%c0_49, %c0_50, %c0_51] : memref<1x1x128xf32, #tpu.memory_space<vmem>>, vector<1x1x128xf32>
    %121 = vector.shape_cast %120 : vector<1x1x128xf32> to vector<1x128xf32>
    %122 = vector.broadcast %121 : vector<1x128xf32> to vector<5x128xf32>
    %123 = arith.addf %119, %122 : vector<5x128xf32>
    %cst_52 = arith.constant 5.000000e-01 : f32
    %124 = vector.broadcast %cst_52 : f32 to vector<5x128xf32>
    %125 = arith.mulf %124, %123 : vector<5x128xf32>
    %cst_53 = arith.constant 4.471500e-02 : f32
    %126 = vector.broadcast %cst_53 : f32 to vector<5x128xf32>
    %127 = arith.mulf %126, %123 : vector<5x128xf32>
    %128 = arith.mulf %127, %123 : vector<5x128xf32>
    %129 = arith.mulf %128, %123 : vector<5x128xf32>
    %130 = arith.addf %123, %129 : vector<5x128xf32>
    %cst_54 = arith.constant 0.797884583 : f32
    %131 = vector.broadcast %cst_54 : f32 to vector<5x128xf32>
    %132 = arith.mulf %131, %130 : vector<5x128xf32>
    %133 = math.tanh %132 : vector<5x128xf32>
    %cst_55 = arith.constant 1.000000e+00 : f32
    %134 = vector.broadcast %cst_55 : f32 to vector<5x128xf32>
    %135 = arith.addf %134, %133 : vector<5x128xf32>
    %136 = arith.mulf %125, %135 : vector<5x128xf32>
    %137 = arith.truncf %136 : vector<5x128xf32> to vector<5x128xbf16>
    %c0_56 = arith.constant 0 : index
    %c0_57 = arith.constant 0 : index
    %c0_58 = arith.constant 0 : index
    %138 = vector.load %arg15[%c0_56, %c0_57, %c0_58] : memref<1x128x32xbf16, #tpu.memory_space<vmem>>, vector<1x128x32xbf16>
    %139 = vector.shape_cast %138 : vector<1x128x32xbf16> to vector<128x32xbf16>
    %cst_59 = arith.constant dense<0.000000e+00> : vector<5x32xf32>
    %140 = tpu.matmul %137, %139, %cst_59 {dimension_numbers = #tpu.dot_dimension_numbers<[1], [0], [0], [1], [0, 0, 1, 1], [], []>} : vector<5x128xbf16>, vector<128x32xbf16>, vector<5x32xf32> -> vector<5x32xf32>
    %c0_60 = arith.constant 0 : index
    %c0_61 = arith.constant 0 : index
    %c0_62 = arith.constant 0 : index
    %141 = vector.load %arg16[%c0_60, %c0_61, %c0_62] : memref<1x1x32xf32, #tpu.memory_space<vmem>>, vector<1x1x32xf32>
    %142 = vector.shape_cast %141 : vector<1x1x32xf32> to vector<1x32xf32>
    %143 = vector.broadcast %142 : vector<1x32xf32> to vector<5x32xf32>
    %144 = arith.addf %140, %143 : vector<5x32xf32>
    %145 = arith.addf %87, %144 : vector<5x32xf32>
    %c0_63 = arith.constant 0 : index
    %c0_64 = arith.constant 0 : index
    %146 = vector.load %arg20[%c0_63, %c0_64] : memref<5x32xf32, #tpu.memory_space<vmem>>, vector<5x32xf32>
    tpu.vector_store %arg20[%c0_63, %c0_64], %145 {strides = array<i32>} : memref<5x32xf32, #tpu.memory_space<vmem>>, vector<5x32xf32>,
    %c1_i32 = arith.constant 1 : i32
    %147 = arith.cmpi eq, %arg1, %c1_i32 : i32
    %148 = arith.extui %147 : i1 to i32
    %c0_i32_65 = arith.constant 0 : i32
    %149 = arith.cmpi ne, %148, %c0_i32_65 : i32
    scf.if %149 {
      %c0_66 = arith.constant 0 : index
      %c0_67 = arith.constant 0 : index
      %150 = vector.load %arg17[%c0_66, %c0_67] : memref<1x32xf32, #tpu.memory_space<vmem>>, vector<1x32xf32>
      %c0_68 = arith.constant 0 : index
      %c0_69 = arith.constant 0 : index
      %151 = vector.load %arg18[%c0_68, %c0_69] : memref<1x32xf32, #tpu.memory_space<vmem>>, vector<1x32xf32>
      %cst_70 = arith.constant dense<0.000000e+00> : vector<5xf32>
      %152 = vector.multi_reduction <add>, %145, %cst_70 [1] : vector<5x32xf32> to vector<5xf32>
      %153 = vector.shape_cast %152 : vector<5xf32> to vector<5x1xf32>
      %cst_71 = arith.constant 3.200000e+01 : f32
      %154 = vector.broadcast %cst_71 : f32 to vector<5x1xf32>
      %155 = arith.divf %153, %154 : vector<5x1xf32>
      %156 = vector.broadcast %155 : vector<5x1xf32> to vector<5x32xf32>
      %157 = arith.subf %145, %156 : vector<5x32xf32>
      %158 = vector.broadcast %155 : vector<5x1xf32> to vector<5x32xf32>
      %159 = arith.subf %145, %158 : vector<5x32xf32>
      %160 = arith.mulf %157, %159 : vector<5x32xf32>
      %cst_72 = arith.constant dense<0.000000e+00> : vector<5xf32>
      %161 = vector.multi_reduction <add>, %160, %cst_72 [1] : vector<5x32xf32> to vector<5xf32>
      %162 = vector.shape_cast %161 : vector<5xf32> to vector<5x1xf32>
      %cst_73 = arith.constant 3.200000e+01 : f32
      %163 = vector.broadcast %cst_73 : f32 to vector<5x1xf32>
      %164 = arith.divf %162, %163 : vector<5x1xf32>
      %165 = vector.broadcast %155 : vector<5x1xf32> to vector<5x32xf32>
      %166 = arith.subf %145, %165 : vector<5x32xf32>
      %cst_74 = arith.constant 9.99999997E-7 : f32
      %167 = vector.broadcast %cst_74 : f32 to vector<5x1xf32>
      %168 = arith.addf %164, %167 : vector<5x1xf32>
      %169 = math.rsqrt %168 : vector<5x1xf32>
      %170 = vector.broadcast %169 : vector<5x1xf32> to vector<5x32xf32>
      %171 = arith.mulf %166, %170 : vector<5x32xf32>
      %172 = vector.broadcast %150 : vector<1x32xf32> to vector<5x32xf32>
      %173 = arith.mulf %171, %172 : vector<5x32xf32>
      %174 = vector.broadcast %151 : vector<1x32xf32> to vector<5x32xf32>
      %175 = arith.addf %173, %174 : vector<5x32xf32>
      %c0_75 = arith.constant 0 : index
      %c0_76 = arith.constant 0 : index
      %c0_77 = arith.constant 0 : index
      %176 = vector.load %arg19[%c0_75, %c0_76, %c0_77] : memref<1x5x32xf32, #tpu.memory_space<vmem>>, vector<1x5x32xf32>
      %177 = vector.shape_cast %176 : vector<1x5x32xf32> to vector<5x32xf32>
      %178 = vector.shape_cast %175 : vector<5x32xf32> to vector<1x5x32xf32>
      tpu.vector_store %arg19[%c0_75, %c0_76, %c0_77], %178 {strides = array<i32>} : memref<1x5x32xf32, #tpu.memory_space<vmem>>, vector<1x5x32xf32>,
    } else {
    }
    return
  }
  func.func @transform_0(%arg0: i32, %arg1: i32) -> (i32, i32, i32) {
    %c0_i32 = arith.constant 0 : i32
    %c0_i32_0 = arith.constant 0 : i32
    %c0_i32_1 = arith.constant 0 : i32
    return %arg0, %c0_i32, %c0_i32_0 : i32, i32, i32
  }
  func.func @transform_1(%arg0: i32, %arg1: i32) -> (i32, i32) {
    %c0_i32 = arith.constant 0 : i32
    %c0_i32_0 = arith.constant 0 : i32
    %c0_i32_1 = arith.constant 0 : i32
    return %c0_i32, %c0_i32_0 : i32, i32
  }
  func.func @transform_2(%arg0: i32, %arg1: i32) -> (i32, i32) {
    %c0_i32 = arith.constant 0 : i32
    %c0_i32_0 = arith.constant 0 : i32
    %c0_i32_1 = arith.constant 0 : i32
    return %c0_i32, %c0_i32_0 : i32, i32
  }
  func.func @transform_3(%arg0: i32, %arg1: i32) -> (i32, i32, i32) {
    %c0_i32 = arith.constant 0 : i32
    %c0_i32_0 = arith.constant 0 : i32
    %c0_i32_1 = arith.constant 0 : i32
    return %arg1, %c0_i32, %c0_i32_0 : i32, i32, i32
  }
  func.func @transform_4(%arg0: i32, %arg1: i32) -> (i32, i32, i32) {
    %c0_i32 = arith.constant 0 : i32
    %c0_i32_0 = arith.constant 0 : i32
    %c0_i32_1 = arith.constant 0 : i32
    return %arg1, %c0_i32, %c0_i32_0 : i32, i32, i32
  }
  func.func @transform_5(%arg0: i32, %arg1: i32) -> (i32, i32, i32) {
    %c0_i32 = arith.constant 0 : i32
    %c0_i32_0 = arith.constant 0 : i32
    %c0_i32_1 = arith.constant 0 : i32
    return %arg1, %c0_i32, %c0_i32_0 : i32, i32, i32
  }
  func.func @transform_6(%arg0: i32, %arg1: i32) -> (i32, i32, i32) {
    %c0_i32 = arith.constant 0 : i32
    %c0_i32_0 = arith.constant 0 : i32
    %c0_i32_1 = arith.constant 0 : i32
    return %arg1, %c0_i32, %c0_i32_0 : i32, i32, i32
  }
  func.func @transform_7(%arg0: i32, %arg1: i32) -> (i32, i32, i32) {
    %c0_i32 = arith.constant 0 : i32
    %c0_i32_0 = arith.constant 0 : i32
    %c0_i32_1 = arith.constant 0 : i32
    return %arg1, %c0_i32, %c0_i32_0 : i32, i32, i32
  }
  func.func @transform_8(%arg0: i32, %arg1: i32) -> (i32, i32, i32) {
    %c0_i32 = arith.constant 0 : i32
    %c0_i32_0 = arith.constant 0 : i32
    %c0_i32_1 = arith.constant 0 : i32
    return %arg1, %c0_i32, %c0_i32_0 : i32, i32, i32
  }
  func.func @transform_9(%arg0: i32, %arg1: i32) -> (i32, i32, i32) {
    %c0_i32 = arith.constant 0 : i32
    %c0_i32_0 = arith.constant 0 : i32
    %c0_i32_1 = arith.constant 0 : i32
    return %arg1, %c0_i32, %c0_i32_0 : i32, i32, i32
  }
  func.func @transform_10(%arg0: i32, %arg1: i32) -> (i32, i32, i32) {
    %c0_i32 = arith.constant 0 : i32
    %c0_i32_0 = arith.constant 0 : i32
    %c0_i32_1 = arith.constant 0 : i32
    return %arg1, %c0_i32, %c0_i32_0 : i32, i32, i32
  }
  func.func @transform_11(%arg0: i32, %arg1: i32) -> (i32, i32, i32) {
    %c0_i32 = arith.constant 0 : i32
    %c0_i32_0 = arith.constant 0 : i32
    %c0_i32_1 = arith.constant 0 : i32
    return %arg1, %c0_i32, %c0_i32_0 : i32, i32, i32
  }
  func.func @transform_12(%arg0: i32, %arg1: i32) -> (i32, i32, i32) {
    %c0_i32 = arith.constant 0 : i32
    %c0_i32_0 = arith.constant 0 : i32
    %c0_i32_1 = arith.constant 0 : i32
    return %arg1, %c0_i32, %c0_i32_0 : i32, i32, i32
  }
  func.func @transform_13(%arg0: i32, %arg1: i32) -> (i32, i32, i32) {
    %c0_i32 = arith.constant 0 : i32
    %c0_i32_0 = arith.constant 0 : i32
    %c0_i32_1 = arith.constant 0 : i32
    return %arg1, %c0_i32, %c0_i32_0 : i32, i32, i32
  }
  func.func @transform_14(%arg0: i32, %arg1: i32) -> (i32, i32, i32) {
    %c0_i32 = arith.constant 0 : i32
    %c0_i32_0 = arith.constant 0 : i32
    %c0_i32_1 = arith.constant 0 : i32
    return %arg1, %c0_i32, %c0_i32_0 : i32, i32, i32
  }
  func.func @transform_15(%arg0: i32, %arg1: i32) -> (i32, i32) {
    %c0_i32 = arith.constant 0 : i32
    %c0_i32_0 = arith.constant 0 : i32
    %c0_i32_1 = arith.constant 0 : i32
    return %c0_i32, %c0_i32_0 : i32, i32
  }
  func.func @transform_16(%arg0: i32, %arg1: i32) -> (i32, i32) {
    %c0_i32 = arith.constant 0 : i32
    %c0_i32_0 = arith.constant 0 : i32
    %c0_i32_1 = arith.constant 0 : i32
    return %c0_i32, %c0_i32_0 : i32, i32
  }
  func.func @transform_17(%arg0: i32, %arg1: i32) -> (i32, i32, i32) {
    %c0_i32 = arith.constant 0 : i32
    %c0_i32_0 = arith.constant 0 : i32
    %c0_i32_1 = arith.constant 0 : i32
    return %arg0, %c0_i32, %c0_i32_0 : i32, i32, i32
  }
}

</mosaic_0001>

<bundles_post_ra>
// kernel: dino_feature_extractor_forward.1
= control target key start
LH: loop header
LB: loop body
LE: loop exit
PB: predicated region body
PF: predicated region fallthrough
CT: control target
= control target key end

     0   :  { %s2284_s24 = smov 0   ;;  %s2286_s25 = smov 0   ;;  %s2625_s0 = inlined_call_operand.vmem [shape: f32[2,4,588], index: 0, kind: input, shape index: {}]   ;;  %s2626_s1 = inlined_call_operand.vmem [shape: bf16[588,32], index: 1, kind: input, shape index: {}]   ;;  %s2627_s2 = inlined_call_operand.vmem [shape: f32[5,32], index: 2, kind: input, shape index: {}]   ;;  %s2628_s3 = inlined_call_operand.vmem [shape: f32[2,1,32], index: 3, kind: input, shape index: {}]   ;;  %s2629_s4 = inlined_call_operand.vmem [shape: f32[2,1,32], index: 4, kind: input, shape index: {}]   ;;  %s2630_s5 = inlined_call_operand.vmem [shape: bf16[2,32,96], index: 5, kind: input, shape index: {}]   ;;  %s2631_s6 = inlined_call_operand.vmem [shape: f32[2,1,96], index: 6, kind: input, shape index: {}]   ;;  %s2632_s7 = inlined_call_operand.vmem [shape: bf16[2,32,32], index: 7, kind: input, shape index: {}]   ;;  %s2633_s8 = inlined_call_operand.vmem [shape: f32[2,1,32], index: 8, kind: input, shape index: {}]   ;;  %s2634_s9 = inlined_call_operand.vmem [shape: f32[2,1,32], index: 9, kind: input, shape index: {}]   ;;  %s2635_s10 = inlined_call_operand.vmem [shape: f32[2,1,32], index: 10, kind: input, shape index: {}]   ;;  %s2636_s11 = inlined_call_operand.vmem [shape: bf16[2,32,128], index: 11, kind: input, shape index: {}]   ;;  %s2637_s12 = inlined_call_operand.vmem [shape: f32[2,1,128], index: 12, kind: input, shape index: {}]   ;;  %s2638_s13 = inlined_call_operand.vmem [shape: bf16[2,128,32], index: 13, kind: input, shape index: {}]   ;;  %s2639_s14 = inlined_call_operand.vmem [shape: f32[2,1,32], index: 14, kind: input, shape index: {}]   ;;  %s2640_s15 = inlined_call_operand.vmem [shape: f32[1,32], index: 15, kind: input, shape index: {}]   ;;  %s2641_s16 = inlined_call_operand.vmem [shape: f32[1,32], index: 16, kind: input, shape index: {}]   ;;  %s2642_s17 = inlined_call_operand.vmem [shape: f32[2,5,32], index: 17, kind: output, shape index: {}]  }
   0x1   :  { %2649 = sst [smem:[#allocation9_spill]] %s2625_s0  ;;  %s2288_s26 = smov 0  }
   0x2   :  { %2650 = sst [smem:[#allocation10_spill]] %s2626_s1  ;;  %s2290_s27 = smov 0  }
   0x3   :  { %2651 = sst [smem:[#allocation11_spill]] %s2627_s2  ;;  %s2292_s28 = smov 0  }
   0x4   :  { %2652 = sst [smem:[#allocation12_spill]] %s2629_s4 }
   0x5   :  { %2653 = sst [smem:[#allocation13_spill]] %s2630_s5 }
   0x6   :  { %2654 = sst [smem:[#allocation14_spill]] %s2632_s7 }
   0x7   :  { %2655 = sst [smem:[#allocation15_spill]] %s2640_s15 }
   0x8   :  { %2656 = sst [smem:[#allocation16_spill]] %s2641_s16 }
   0x9   :  { %2657 = sst [smem:[#allocation17_spill]] %s2642_s17 }
   0xa LB: > { %2658 = sst [smem:[#allocation3_spill]] %s2168_s24  ;;  %s36_s29 = sadd.s32 1, %s2176_s26  ;;  %s2184_s28 = sphi %s2292_s28, %s27_s28   ;;  %s2180_s27 = sphi %s2290_s27, %s2687_s27   ;;  %s2176_s26 = sphi %s2288_s26, %s2686_s26   ;;  %s2172_s25 = sphi %s2286_s25, %s2685_s25   ;;  %s2168_s24 = sphi %s2284_s24, %s2684_s24  }
   0xb   : > { %2659 = sst [smem:[#allocation4_spill]] %s2176_s26  ;;  %s39_s0 = sadd.s32 1, %s2180_s27 }
   0xc   : > { %2660 = sst [smem:[#allocation5_spill]] %s2180_s27  ;;  %p37_p0 = scmp.ge.s32.totalorder %s36_s29, 2 }
   0xd   : > { %2661 = sst [smem:[#allocation6_spill]] %s2184_s28  ;;  %p1787_p1 = scmp.ge.s32.totalorder %s2184_s28, 1 }
   0xe   : > { %p603_p2 = scmp.lt.s32.totalorder %s2184_s28, 5  ;;  %s2689_s29 = smov (%p37_p0, %s36_s29), 0 }
   0xf   : > { %2662 = sst [smem:[#allocation7_spill]] %s2689_s29  ;;  %s2691_s0 = smov (!%p37_p0, %s39_s0), %s2180_s27 }
  0x10   : > { %p604_p3 = pnand %p1787_p1, %p603_p2  ;;  %p41_p4 = scmp.ge.s32.totalorder %s2691_s0, 2 }
  0x11   : > { %p698_p5 = scmp.lt.s32.totalorder (!%p604_p3), %s2172_s25, 1  ;;  %p703_p6 = scmp.lt.s32.totalorder (!%p604_p3), %s2168_s24, 1 }
  0x12   : > { %s2693_s0 = smov (%p41_p4, %s2691_s0), 0  ;;  %607 = sbr.rel (%p604_p3) target bundleno = 2755 (0xac3), region = 88 }
  0x13   : > { %2663 = sst [smem:[#allocation8_spill]] %s2693_s0 }
  0x14   : > { %s2665_s26 = sld [smem:[#allocation9_spill]] (!%p604_p3) }
  0x15   : > { %s2666_s5 = sld [smem:[#allocation13_spill]] (!%p604_p3) }
  0x16   : > { %s2667_s7 = sld [smem:[#allocation14_spill]] (!%p604_p3) }
  0x17   : > { %s2695_s25 = smov (!%p698_p5, %s2172_s25), 1 }
  0x18   : > { %s2318_s30 = scalar_select %p703_p6, %s2168_s24, 1 }
  0x19   : > { %s2069_s18 = smul.u32 20, %s2695_s25  ;;  %s1797_s19 = sshll.u32 %s2695_s25, 3 }
  0x1a   : > { %s2014_s16 = sshll.u32 %s2318_s30, 4 }
  0x1b   : > { %s2331_s28 = scalar_lea.vmem %s2665_s26, %s2069_s18  ;;  %s2337_s24 = scalar_lea.vmem %s2666_s5, %s2014_s16 }
  0x1c   : > { %s2346_s22 = scalar_lea.vmem %s2667_s7, %s2014_s16  ;;  %s2363_s25 = scalar_lea.vmem %s2636_s11, %s2014_s16 }
  0x1d   : > { %s2017_s7 = sshll.u32 %s2318_s30, 6  ;;  %s746_s26 = scalar_lea.vmem %s2639_s14, %s2318_s30 }
  0x1e   : > { %s2377_s18 = scalar_lea.vmem %s2638_s13, %s2017_s7  ;;  %s2668_s5 = sld [smem:[#allocation17_spill]] }
  0x1f   : > { %s2669_s16 = sld [smem:[#allocation3_spill]] }
  0x24   : > { %s2382_s4 = scalar_lea.vmem %s2668_s5, %s1797_s19 }
  0x25   : > { %p1798_p7 = scmp.ne.s32.totalorder %s2669_s16, 0 }
  0x26   : > { %s2670_s20 = sld [smem:[#allocation10_spill]] (!%p1798_p7) }
  0x27   : > { %755 = sbr.rel (%p1798_p7) target bundleno = 230 (0xe6), region = 92  ;;  %s2671_s2 = sld [smem:[#allocation11_spill]] (!%p1798_p7) }
  0x2c   : > { %v2025_v0 = vld [vmem:[%s2670_s20 + $0x38] sm:$0xff]  ;;  %v2024_v4 = vld [vmem:[%s2670_s20 + $0x30] sm:$0xff]  ;;  %v2023_v8 = vld [vmem:[%s2670_s20 + $0x28] sm:$0xff]  ;;  %vm1083_vm0 = vcmask 1045504   ;;  %vm1079_vm1 = vcmask 621568   ;;  %vm1155_vm2 = vcmask 1040384  }
  0x2d   : > { %v2041_v1 = vld [vmem:[%s2670_s20 + $0xb8] sm:$0xff]  ;;  %1087 = vmatpush.bf16.msra.mxu0 %v2025_v0  ;;  %v2040_v5 = vld [vmem:[%s2670_s20 + $0xb0] sm:$0xff]  ;;  %v2039_v9 = vld [vmem:[%s2670_s20 + $0xa8] sm:$0xff]  ;;  %vm1157_vm3 = vcmask 258048  }
  0x2e   : > { %v2049_v2 = vld [vmem:[%s2670_s20 + $0xf8] sm:$0xff]  ;;  %1113 = vmatpush.bf16.msra.mxu2 %v2041_v1  ;;  %v2048_v6 = vld [vmem:[%s2670_s20 + $0xf0] sm:$0xff]  ;;  %v2047_v10 = vld [vmem:[%s2670_s20 + $0xe8] sm:$0xff] }
  0x2f   : > { %v2033_v3 = vld [vmem:[%s2670_s20 + $0x78] sm:$0xff]  ;;  %1126 = vmatpush.bf16.msra.mxu3 %v2049_v2  ;;  %v2032_v7 = vld [vmem:[%s2670_s20 + $0x70] sm:$0xff]  ;;  %v2031_v11 = vld [vmem:[%s2670_s20 + $0x68] sm:$0xff] }
  0x30   : > { %1100 = vmatpush.bf16.msra.mxu1 %v2033_v3  ;;  %v2022_v12 = vld [vmem:[%s2670_s20 + $0x20] sm:$0xff]  ;;  %v757_v17 = vld [vmem:[%s2331_s28 + $0x8] sm:$0xff]  ;;  %v758_v18 = vld [vmem:[%s2331_s28 + $0x10] sm:$0xf] }
  0x31   : > { %1088 = vmatpush.bf16.msra.mxu0 %v2024_v4  ;;  %v2038_v13 = vld [vmem:[%s2670_s20 + $0xa0] sm:$0xff]  ;;  %764 = vst [vmem:[#allocation1 + $0x10] ss:$2 sm:$0xff] %v757_v17  ;;  %v2021_v19 = vld [vmem:[%s2670_s20 + $0x18] sm:$0xff]  ;;  %v2020_v23 = vld [vmem:[%s2670_s20 + $0x10] sm:$0xff] }
  0x32   : > { %1114 = vmatpush.bf16.msra.mxu2 %v2040_v5  ;;  %v2046_v14 = vld [vmem:[%s2670_s20 + $0xe0] sm:$0xff]  ;;  %v2037_v20 = vld [vmem:[%s2670_s20 + $0x98] sm:$0xff]  ;;  %766 = vst [vmem:[#allocation1 + $0x20] ss:$2 sm:$0xff] %v758_v18  ;;  %v2036_v24 = vld [vmem:[%s2670_s20 + $0x90] sm:$0xff] }
  0x33   : > { %1127 = vmatpush.bf16.msra.mxu3 %v2048_v6  ;;  %v2030_v15 = vld [vmem:[%s2670_s20 + $0x60] sm:$0xff]  ;;  %v2045_v21 = vld [vmem:[%s2670_s20 + $0xd8] sm:$0xff]  ;;  %v2044_v25 = vld [vmem:[%s2670_s20 + $0xd0] sm:$0xff] }
  0x34   : > { %1101 = vmatpush.bf16.msra.mxu1 %v2032_v7  ;;  %v756_v16 = vld [vmem:[%s2331_s28] sm:$0xff]  ;;  %v2029_v22 = vld [vmem:[%s2670_s20 + $0x58] sm:$0xff]  ;;  %v2028_v26 = vld [vmem:[%s2670_s20 + $0x50] sm:$0xff] }
  0x35   : > { %1089 = vmatpush.bf16.msra.mxu0 %v2023_v8  ;;  %762 = vst [vmem:[#allocation1] ss:$2 sm:$0xff] %v756_v16  ;;  %v1945_v27 = vld [vmem:[%s2670_s20 + $0x120] sm:$0xf]  ;;  %v2054_v28 = vld [vmem:[%s2670_s20 + $0x120] sm:$0x30] }
  0x36   : > { %1115 = vmatpush.bf16.msra.mxu2 %v2039_v9  ;;  %v2019_v29 = vld [vmem:[%s2670_s20 + $0x8] sm:$0xff]  ;;  %v1946_v33 = vor.u32 %v2054_v28, %v1945_v27  ;;  %v2018_v34 = vld [vmem:[%s2670_s20] sm:$0xff]  ;;  %v2053_v46 = vld [vmem:[%s2670_s20 + $0x118] sm:$0xff] }
  0x37   : > { %1128 = vmatpush.bf16.msra.mxu3 %v2047_v10  ;;  %v2035_v30 = vld [vmem:[%s2670_s20 + $0x88] sm:$0xff]  ;;  %v2034_v35 = vld [vmem:[%s2670_s20 + $0x80] sm:$0xff]  ;;  %v2052_v48 = vld [vmem:[%s2670_s20 + $0x110] sm:$0xff] }
  0x38   : > { %1102 = vmatpush.bf16.msra.mxu1 %v2031_v11  ;;  %v2043_v31 = vld [vmem:[%s2670_s20 + $0xc8] sm:$0xff]  ;;  %v769_v37 = vld.sshfl [vmem:[#allocation1 + $0x10] sm:$0xff pattern:$0x75316420]  ;;  %v2042_v38 = vld [vmem:[%s2670_s20 + $0xc0] sm:$0xff]  ;;  %v1085_v40 = vsel %vm1083_vm0, %v1946_v33, 0 }
  0x39   : > { %1090 = vmatpush.bf16.msra.mxu0 %v2022_v12  ;;  %v2027_v32 = vld [vmem:[%s2670_s20 + $0x48] sm:$0xff]  ;;  %v770_v39 = vld.sshfl [vmem:[#allocation1 + $0x18] sm:$0xff pattern:$0x75316420]  ;;  %v2026_v41 = vld [vmem:[%s2670_s20 + $0x40] sm:$0xff]  ;;  %v779_v44 = vpack.c.bf16 %v769_v37, %v769_v37 }
  0x3a   : > { %1116 = vmatpush.bf16.msra.mxu2 %v2038_v13  ;;  %v780_v45 = vpack.c.bf16 %v770_v39, %v770_v39  ;;  %v2051_v49 = vld [vmem:[%s2670_s20 + $0x108] sm:$0xff]  ;;  %v2050_v50 = vld [vmem:[%s2670_s20 + $0x100] sm:$0xff] }
  0x3b   : > { %1129 = vmatpush.bf16.msra.mxu3 %v2046_v14  ;;  %v771_v51 = vld.sshfl [vmem:[#allocation1 + $0x20] sm:$0xff pattern:$0x75316420] }
  0x3c   : > { %1103 = vmatpush.bf16.msra.mxu1 %v2030_v15  ;;  %v767_v36 = vld.sshfl [vmem:[#allocation1] sm:$0xff pattern:$0x75316420]  ;;  %v768_v42 = vld.sshfl [vmem:[#allocation1 + $0x8] sm:$0xff pattern:$0x75316420]  ;;  %v781_v52 = vpack.c.bf16 %v771_v51, %v771_v51 }
  0x3d   : > { %1091 = vmatpush.bf16.msra.mxu0 %v2021_v19  ;;  %v777_v43 = vpack.c.bf16 %v767_v36, %v767_v36  ;;  %v778_v47 = vpack.c.bf16 %v768_v42, %v768_v42  ;;  %v857_v54 = vld [vmem:[%s2671_s2 + $0x1] sm:$0xf]  ;;  %v856_v4 = vld [vmem:[%s2671_s2] sm:$0x1] }
  0x3e   : > { %1117 = vmatpush.bf16.msra.mxu2 %v2037_v20 }
  0x3f   : > { %1130 = vmatpush.bf16.msra.mxu3 %v2045_v21 }
  0x40   : > { %1104 = vmatpush.bf16.msra.mxu1 %v2029_v22 }
  0x41   : > { %1092 = vmatpush.bf16.msra.mxu0 %v2020_v23 }
  0x42   : > { %1118 = vmatpush.bf16.msra.mxu2 %v2036_v24 }
  0x43   : > { %1131 = vmatpush.bf16.msra.mxu3 %v2044_v25 }
  0x44   : > { %1105 = vmatpush.bf16.msra.mxu1 %v2028_v26 }
  0x45   : > { %1093 = vmatpush.bf16.msra.mxu0 %v2019_v29 }
  0x46   : > { %1119 = vmatpush.bf16.msra.mxu2 %v2035_v30 }
  0x47   : > { %1132 = vmatpush.bf16.msra.mxu3 %v2043_v31 }
  0x48   : > { %1106 = vmatpush.bf16.msra.mxu1 %v2027_v32 }
  0x49   : > { %1094 = vmatpush.bf16.msra.mxu0 %v2018_v34 }
  0x4a   : > { %1120 = vmatpush.bf16.msra.mxu2 %v2034_v35 }
  0x4b   : > { %1133 = vmatpush.bf16.msra.mxu3 %v2042_v38 }
  0x4c   : > { %1107 = vmatpush.bf16.msra.mxu1 %v2026_v41  ;;  %1095 = vmatmul.bf16.vlgmr.msra.gmra.mxu0 %v777_v43 }
  0x4d   : > { %1142 = vmatpush.bf16.msrb.mxu0 %v1085_v40  ;;  %1121 = vmatmul.bf16.vlgmr.msra.gmra.mxu2 %v779_v44 }
  0x4e   : > { %1134 = vmatmul.bf16.vlgmr.msra.gmra.mxu3 %v780_v45 }
  0x4f   : > { %1108 = vmatmul.bf16.vlgmr.msra.gmra.mxu1 %v778_v47 }
  0x51   : > { %1143 = vmatpush.bf16.msrb.mxu0 %v2053_v46 }
  0x55   : > { %1144 = vmatpush.bf16.msrb.mxu0 %v2052_v48 }
  0x59   : > { %1145 = vmatpush.bf16.msrb.mxu0 %v2051_v49 }
  0x5d   : > { %1146 = vmatpush.bf16.msrb.mxu0 %v2050_v50 }
  0x60   : > { %1947 = vmatmul.msk.bf16.vlgmr.msrb.gmra.mxu0 %vm1079_vm1, %v781_v52 }
  0xc9   : > { %v1096_v53 = vpop.f32.mrf.mxu0 }
  0xca   : > { %v1097_v56 = vadd.f32 %v1096_v53, %v857_v54 }
  0xcc   : > { %v1109_v55 = vpop.f32.mrf.mxu1 }
  0xcd   : > { %v1110_v59 = vadd.f32 %v1109_v55, %v1097_v56 }
  0xd0   : > { %v1122_v57 = vpop.f32.mrf.mxu2 }
  0xd1   : > { %v1135_v58 = vpop.f32.mrf.mxu3  ;;  %v1098_v60 = vpop.f32.mrf.mxu0  ;;  %v1123_v62 = vadd.f32 %v1122_v57, %v1110_v59 }
  0xd3   : > { %v1136_v1 = vadd.f32 %v1135_v58, %v1123_v62 }
  0xd4   : > { %v1111_v61 = vpop.f32.mrf.mxu1 }
  0xd8   : > { %v1124_v63 = vpop.f32.mrf.mxu2 }
  0xd9   : > { %v1137_v0 = vpop.f32.mrf.mxu3 }
  0xdd   : > { %v1148_v2 = vpop.f32.mrf.mxu0 }
  0xde   : > { %v1149_v3 = vadd.f32 %v1148_v2, %v1136_v1 }
  0xe0   : > { %v1153_v5 = vrot.slane %v1149_v3, 7 }
  0xe2   : > { %v1156_v6 = vsel %vm1155_vm2, %v856_v4, %v1153_v5 }
  0xe3   : > { %1158 = vst.msk [vmem:[#allocation2] sm:$0x1f] %vm1157_vm3, %v1156_v6 }
  0xe5   : > { %v1150_v7 = vpop.f32.mrf.mxu0 }
  0xe6 PF: > { %vm1162_vm4 = vcmask 258048   ;;  %v2186_v10 = vmov 32.0   ;;  %v2056_v22 = vld [vmem:[%s2337_s24 + $0x8] sm:$0xff]  ;;  %v2055_v23 = vld [vmem:[%s2337_s24] sm:$0xff]  ;;  %s2672_s24 = scalar_lea.vmem %s2628_s3, %s2318_s30  ;;  %s2673_s0 = sld [smem:[#allocation12_spill]]  ;;  %vm1221_vm9 = vcmask 261120  }
  0xe7   : > { %2126 = vrcp.f32 %v2186_v10  ;;  %1231 = vmatpush.bf16.msra.mxu0 %v2056_v22  ;;  %v2118_v33 = vld [vmem:[%s2672_s24] ss:$0 sm:$0xff]  ;;  %s2675_s29 = scalar_lea.vmem %s2631_s6, %s2318_s30  ;;  %s2187_s5 = smov 80   ;;  %vm1281_vm10 = vcmask 1041408   ;;  %vm1282_vm11 = vcmask 1042432   ;;  %v2190_v45 = vmov 65535  }
  0xe8   : > { %v2120_v40 = vld [vmem:[%s2675_s29] ss:$0 sm:$0xff]  ;;  %s2188_s19 = smov 64   ;;  %s2189_s15 = smov 96   ;;  %v1283_v46 = vsel %vm1281_vm10, 4294967295, %v2190_v45  ;;  %vm1242_vm12 = vcmask 130048  }
  0xe9   : > { %v1284_v47 = vsel %vm1282_vm11, %v1283_v46, 0  ;;  %vm1262_vm13 = vcmask 36864   ;;  %s2191_s1 = smov 48   ;;  %s2192_s16 = smov 112   ;;  %vm1277_vm14 = vcmask 39936   ;;  %v2057_v22 = vld [vmem:[%s2346_s22] sm:$0xff] }
  0xea   : > { %v2508_v8 = vld [vmem:[#allocation2] sm:$0x1f]  ;;  %s2193_s28 = smov 16   ;;  %s2676_s21 = scalar_lea.vmem %s2633_s8, %s2318_s30 }
  0xeb   : > { %v1163_v9 = vsel %vm1162_vm4, %v2508_v8, 0.0  ;;  %1232 = vmatpush.bf16.msra.mxu0 %v2055_v23  ;;  %s2678_s7 = scalar_lea.vmem %s2635_s10, %s2318_s30 }
  0xec   : > { %1164 = vadd.xlane.f32.xlu0 %v1163_v9  ;;  %s2674_s23 = scalar_lea.vmem %s2673_s0, %s2318_s30  ;;  %s2677_s0 = scalar_lea.vmem %s2634_s9, %s2318_s30 }
  0xed   : > { %v2127_v11 = vpop.eup %2126  ;;  %v2119_v36 = vld [vmem:[%s2674_s23] ss:$0 sm:$0xff] }
  0xee   : > { %v1167_v12 = vmul.f32 32.0, %v2127_v11  ;;  %vm1171_vm5 = vweird.f32 %v2127_v11 }
  0xf0   : > { %v1168_v13 = vsub.f32 1.0, %v1167_v12 }
  0xf2   : > { %v1169_v14 = vmul.f32 %v2127_v11, %v1168_v13 }
  0xf4   : > { %v1170_v15 = vadd.f32 %v2127_v11, %v1169_v14 }
  0xf6   : > { %v2512_v16 = vsel %vm1171_vm5, %v2127_v11, %v1170_v15 }
 0x15f   : > { %v1165_v17 = vpop.xlane.xlu0 %1164 }
 0x160   : > { %v1173_v18 = vmul.f32 %v2512_v16, %v1165_v17 }
 0x162   : > { %v1174_v19 = vsub.f32 %v2508_v8, %v1173_v18 }
 0x164   : > { %v1175_v20 = vmul.f32 %v1174_v19, %v1174_v19 }
 0x166   : > { %v1176_v21 = vsel %vm1162_vm4, %v1175_v20, 0.0 }
 0x167   : > { %1177 = vadd.xlane.f32.xlu0 %v1176_v21  ;;  %v2058_v21 = vld [vmem:[%s2346_s22 + $0x8] sm:$0xff] }
 0x168   : > { %1392 = vmatpush.bf16.msrb.mxu0 %v2058_v21 }
 0x16c   : > { %1393 = vmatpush.bf16.msrb.mxu0 %v2057_v22 }
 0x1da   : > { %v1178_v24 = vpop.xlane.xlu0 %1177 }
 0x1db   : > { %v1179_v25 = vmul.f32 %v1178_v24, %v2512_v16 }
 0x1dd   : > { %v1180_v26 = vadd.f32 1e-06, %v1179_v25 }
 0x1df   : > { %2128 = vrsqrt.f32 %v1180_v26  ;;  %vm1187_vm7 = vweird.f32 %v1180_v26 }
 0x1e5   : > { %v2129_v27 = vpop.eup %2128 }
 0x1e6   : > { %v1182_v28 = vmul.f32 %v2129_v27, %v1180_v26  ;;  %vm1188_vm6 = vweird.f32 %v2129_v27 }
 0x1e7   : > { %vm1189_vm8 = vmor %vm1187_vm7, %vm1188_vm6 }
 0x1e8   : > { %v1183_v29 = vmul.f32 %v2129_v27, %v1182_v28  ;;  %v2121_v28 = vld [vmem:[%s2676_s21] ss:$0 sm:$0xff] }
 0x1ea   : > { %v1184_v30 = vmul.f32 0.5, %v1183_v29 }
 0x1ec   : > { %v1185_v31 = vsub.f32 1.5, %v1184_v30 }
 0x1ee   : > { %v1186_v32 = vmul.f32 %v2129_v27, %v1185_v31 }
 0x1f0   : > { %v1190_v34 = vsel %vm1189_vm8, %v2129_v27, %v1186_v32 }
 0x1f1   : > { %v1191_v35 = vmul.f32 %v1190_v34, %v1174_v19 }
 0x1f3   : > { %v1195_v37 = vmul.f32 %v2118_v33, %v1191_v35 }
 0x1f5   : > { %v1199_v38 = vadd.f32 %v2119_v36, %v1195_v37 }
 0x1f7   : > { %v1200_v39 = vpack.c.bf16 %v1199_v38, %v1199_v38 }
 0x1f9   : > { %1956 = vmatmul.msk.bf16.vlgmr.msra.gmra.mxu0 %vm1221_vm9, %v1200_v39  ;;  %v2060_v39 = vld [vmem:[%s2363_s25 + $0x8] sm:$0xff] }
 0x276   : > { %v1234_v41 = vpop.f32.mrf.mxu0 }
 0x277   : > { %v1235_v42 = vadd.f32 %v2120_v40, %v1234_v41  ;;  %v2059_v40 = vld [vmem:[%s2363_s25] sm:$0xff] }
 0x279   : > { %v1238_v43 = vpack.c.bf16 %v1235_v42, %v1235_v42 }
 0x27b   : > { %1303 = vrot.lane.b32.xlu0 %v1238_v43, %s2187_s5  ;;  %1275 = vrot.lane.b32.xlu2 %v1238_v43, %s2188_s19  ;;  %s2679_s19 = scalar_lea.vmem %s2637_s12, %s2318_s30 }
 0x27c   : > { %1240 = vrot.lane.b32.xlu1 %v1238_v43, %s2189_s15 }
 0x27e   : > { %v1236_v44 = vpop.f32.mrf.mxu0 }
 0x2d5   : > { %v1276_v48 = vpop.permute.xlu2 %1275 }
 0x2d6   : > { %v1286_v49 = vand.u32 %v1284_v47, %v1276_v48 }
 0x2d8   : > { %1295 = vmatpush.bf16.msra.mxu2 %v1286_v49 }
 0x2ed   : > { %v1304_v50 = vpop.permute.xlu0 %1303 }
 0x2ee   : > { %v1241_v51 = vpop.permute.xlu1 %1240  ;;  %v1309_v52 = vsel %vm1242_vm12, %v1304_v50, 0 }
 0x2ef   : > { %v1247_v53 = vsel %vm1242_vm12, %v1241_v51, 0  ;;  %1318 = vmatpush.bf16.xpose.msrb.mxu2 %v1309_v52  ;;  %v2122_v51 = vld [vmem:[%s2677_s0] ss:$0 sm:$0xff] }
 0x2f0   : > { %1256 = vmatpush.bf16.xpose.msra.mxu1 %v1247_v53 }
 0x2f7   : > { %1957 = vmatmul.msk.bf16.vlgmr.msra.gmra.mxu1 %vm1242_vm12, %v1238_v43 }
 0x2f8   : > { %1462 = vmatpush.bf16.msrb.mxu1 %v2060_v39 }
 0x2fc   : > { %1463 = vmatpush.bf16.msrb.mxu1 %v2059_v40 }
 0x374   : > { %v1258_v54 = vpop.f32.mrf.mxu1 }
 0x375   : > { %v1263_v55 = vsel %vm1262_vm13, %v1258_v54, -inf }
 0x376   : > { %1264 = vmax.xlane.f32.xlu1 %v1263_v55 }
 0x37c   : > { %v1260_v56 = vpop.f32.mrf.mxu1 }
 0x38f   : > { %1336 = vrot.lane.b32.xlu1 %v1238_v43, %s2191_s1  ;;  %s2680_s1 = sld [smem:[#allocation3_spill]] }
 0x395   : > { %p2011_p8 = scmp.ne.s32.totalorder %s2680_s1, 1 }
 0x396   : > { %s2682_s17 = sld [smem:[#allocation16_spill]] (!%p2011_p8) }
 0x3e9   : > { %v1265_v57 = vpop.xlane.xlu1 %1264 }
 0x3ea   : > { %v1266_v58 = vsub.f32 %v1258_v54, %v1265_v57  ;;  %v2123_v54 = vld [vmem:[%s2678_s7] ss:$0 sm:$0xff] }
 0x3ec   : > { %v1267_v59 = vmul.f32 1.442695, %v1266_v58  ;;  %v2066_v58 = vld [vmem:[%s2377_s18 + $0x28] sm:$0xff] }
 0x3ee   : > { %2130 = vpow2.f32 %v1267_v59  ;;  %v2065_v59 = vld [vmem:[%s2377_s18 + $0x20] sm:$0xff] }
 0x3f4   : > { %v2131_v60 = vpop.eup %2130 }
 0x3f5   : > { %v1269_v61 = vsel %vm1262_vm13, %v2131_v60, 0.0 }
 0x3f6   : > { %1270 = vadd.xlane.f32.xlu2 %v1269_v61  ;;  %v2063_v61 = vld [vmem:[%s2377_s18 + $0x10] sm:$0xff] }
 0x401   : > { %v1337_v0 = vpop.permute.xlu1 %1336 }
 0x402   : > { %v1342_v3 = vand.u32 %v1337_v0, %v1284_v47  ;;  %v2124_v0 = vld [vmem:[%s2679_s19] ss:$0 sm:$0xff] }
 0x40e   : > { %1301 = vrot.lane.b32.xlu2 %v1238_v43, %s2192_s16  ;;  %v2067_v43 = vld [vmem:[%s2377_s18 + $0x30] sm:$0xff]  ;;  %s2681_s16 = sld [smem:[#allocation15_spill]] (!%p2011_p8) }
 0x469   : > { %v1271_v62 = vpop.xlane.xlu2 %1270 }
 0x46a   : > { %2132 = vrcp.f32 %v1271_v62  ;;  %v2062_v62 = vld [vmem:[%s2377_s18 + $0x8] sm:$0xff] }
 0x470   : > { %v2133_v63 = vpop.eup %2132 }
 0x471   : > { %v1273_v1 = vmul.f32 %v2133_v63, %v2131_v60  ;;  %v1302_v4 = vpop.permute.xlu2 %1301  ;;  %v2064_v60 = vld [vmem:[%s2377_s18 + $0x18] sm:$0xff]  ;;  %v2061_v63 = vld [vmem:[%s2377_s18] sm:$0xff] }
 0x473   : > { %v1274_v2 = vpack.c.bf16 %v1273_v1, %v1273_v1 }
 0x475   : > { %1958 = vmatmul.msk.bf16.vlgmr.msra.gmra.mxu2 %vm1277_vm14, %v1274_v2 }
 0x476   : > { %1351 = vmatpush.bf16.msra.mxu2 %v1342_v3 }
 0x485   : > { %1959 = vmatmul.msk.bf16.vlgmr.msrb.gmra.mxu2 %vm1242_vm12, %v1302_v4 }
 0x4f8   : > { %v1297_v5 = vpop.f32.mrf.mxu2 }
 0x500   : > { %v1299_v6 = vpop.f32.mrf.mxu2 }
 0x508   : > { %v1320_v7 = vpop.f32.mrf.mxu2 }
 0x509   : > { %v1324_v9 = vsel %vm1262_vm13, %v1320_v7, -inf }
 0x50a   : > { %1325 = vmax.xlane.f32.xlu0 %v1324_v9 }
 0x510   : > { %v1322_v10 = vpop.f32.mrf.mxu2 }
 0x57d   : > { %v1326_v11 = vpop.xlane.xlu0 %1325 }
 0x57e   : > { %v1327_v12 = vsub.f32 %v1320_v7, %v1326_v11 }
 0x580   : > { %v1328_v13 = vmul.f32 1.442695, %v1327_v12 }
 0x582   : > { %2134 = vpow2.f32 %v1328_v13 }
 0x588   : > { %v2135_v14 = vpop.eup %2134 }
 0x589   : > { %v1330_v15 = vsel %vm1262_vm13, %v2135_v14, 0.0 }
 0x58a   : > { %1331 = vadd.xlane.f32.xlu2 %v1330_v15  ;;  %v2125_v15 = vld [vmem:[%s746_s26] ss:$0 sm:$0xff] }
 0x5fd   : > { %v1332_v17 = vpop.xlane.xlu2 %1331 }
 0x5fe   : > { %2136 = vrcp.f32 %v1332_v17 }
 0x604   : > { %v2137_v18 = vpop.eup %2136 }
 0x605   : > { %v1334_v19 = vmul.f32 %v2137_v18, %v2135_v14 }
 0x607   : > { %v1335_v20 = vpack.c.bf16 %v1334_v19, %v1334_v19 }
 0x609   : > { %1960 = vmatmul.msk.bf16.vlgmr.msra.gmra.mxu2 %vm1277_vm14, %v1335_v20 }
 0x68c   : > { %v1353_v23 = vpop.f32.mrf.mxu2 }
 0x68d   : > { %1358 = vrot.lane.b32.xlu1 %v1353_v23, %s2193_s28 }
 0x694   : > { %v1355_v24 = vpop.f32.mrf.mxu2 }
 0x6ff   : > { %v1359_v25 = vpop.permute.xlu1 %1358 }
 0x700   : > { %v1361_v26 = vsel %vm1242_vm12, %v1297_v5, %v1359_v25 }
 0x701   : > { %v1362_v27 = vpack.c.bf16 %v1361_v26, %v1361_v26 }
 0x703   : > { %1969 = vmatmul.msk.bf16.vlgmr.msrb.gmra.mxu0 %vm1221_vm9, %v1362_v27 }
 0x780   : > { %v1395_v29 = vpop.f32.mrf.mxu0 }
 0x781   : > { %v1396_v30 = vadd.f32 %v2121_v28, %v1395_v29 }
 0x783   : > { %v2556_v31 = vadd.f32 %v1396_v30, %v2508_v8  ;;  %v2068_v8 = vld [vmem:[%s2377_s18 + $0x38] sm:$0xff] }
 0x784   : > { %1547 = vmatpush.bf16.msra.mxu3 %v2068_v8 }
 0x785   : > { %v1402_v32 = vsel %vm1162_vm4, %v2556_v31, 0.0 }
 0x786   : > { %1403 = vadd.xlane.f32.xlu0 %v1402_v32 }
 0x788   : > { %v1397_v33 = vpop.f32.mrf.mxu0  ;;  %1548 = vmatpush.bf16.msra.mxu3 %v2067_v43 }
 0x78c   : > { %1549 = vmatpush.bf16.msra.mxu3 %v2066_v58 }
 0x790   : > { %1550 = vmatpush.bf16.msra.mxu3 %v2065_v59 }
 0x794   : > { %1551 = vmatpush.bf16.msra.mxu3 %v2064_v60 }
 0x798   : > { %1552 = vmatpush.bf16.msra.mxu3 %v2063_v61 }
 0x79c   : > { %1553 = vmatpush.bf16.msra.mxu3 %v2062_v62 }
 0x7a0   : > { %1554 = vmatpush.bf16.msra.mxu3 %v2061_v63 }
 0x7f9   : > { %v1404_v34 = vpop.xlane.xlu0 %1403 }
 0x7fa   : > { %v1405_v35 = vmul.f32 %v1404_v34, %v2512_v16 }
 0x7fc   : > { %v1406_v36 = vsub.f32 %v2556_v31, %v1405_v35 }
 0x7fe   : > { %v1407_v37 = vmul.f32 %v1406_v36, %v1406_v36 }
 0x800   : > { %v1408_v38 = vsel %vm1162_vm4, %v1407_v37, 0.0 }
 0x801   : > { %1409 = vadd.xlane.f32.xlu2 %v1408_v38 }
 0x874   : > { %v1410_v41 = vpop.xlane.xlu2 %1409 }
 0x875   : > { %v1411_v42 = vmul.f32 %v1410_v41, %v2512_v16 }
 0x877   : > { %v1412_v44 = vadd.f32 1e-06, %v1411_v42 }
 0x879   : > { %2138 = vrsqrt.f32 %v1412_v44  ;;  %vm1419_vm0 = vweird.f32 %v1412_v44 }
 0x87f   : > { %v2139_v45 = vpop.eup %2138 }
 0x880   : > { %v1414_v46 = vmul.f32 %v2139_v45, %v1412_v44  ;;  %vm1420_vm15 = vweird.f32 %v2139_v45 }
 0x881   : > { %vm1421_vm1 = vmor %vm1419_vm0, %vm1420_vm15 }
 0x882   : > { %v1415_v47 = vmul.f32 %v2139_v45, %v1414_v46 }
 0x884   : > { %v1416_v48 = vmul.f32 0.5, %v1415_v47 }
 0x886   : > { %v1417_v49 = vsub.f32 1.5, %v1416_v48 }
 0x888   : > { %v1418_v50 = vmul.f32 %v2139_v45, %v1417_v49 }
 0x88a   : > { %v1422_v52 = vsel %vm1421_vm1, %v2139_v45, %v1418_v50 }
 0x88b   : > { %v1423_v53 = vmul.f32 %v1422_v52, %v1406_v36 }
 0x88d   : > { %v1427_v55 = vmul.f32 %v2122_v51, %v1423_v53 }
 0x88f   : > { %v1431_v56 = vadd.f32 %v2123_v54, %v1427_v55 }
 0x891   : > { %v1432_v57 = vpack.c.bf16 %v1431_v56, %v1431_v56 }
 0x893   : > { %1978 = vmatmul.msk.bf16.vlgmr.msrb.gmra.mxu1 %vm1221_vm9, %v1432_v57 }
 0x910   : > { %v1465_v1 = vpop.f32.mrf.mxu1 }
 0x911   : > { %v1466_v2 = vadd.f32 %v2124_v0, %v1465_v1 }
 0x913   : > { %v1470_v3 = vmul.f32 0.044715, %v1466_v2  ;;  %v1469_v11 = vmul.f32 0.5, %v1466_v2 }
 0x915   : > { %v1471_v4 = vmul.f32 %v1470_v3, %v1466_v2 }
 0x917   : > { %v1472_v5 = vmul.f32 %v1471_v4, %v1466_v2 }
 0x918   : > { %v1467_v6 = vpop.f32.mrf.mxu1 }
 0x919   : > { %v1473_v7 = vadd.f32 %v1472_v5, %v1466_v2 }
 0x91b   : > { %v1474_v9 = vmul.f32 0.7978846, %v1473_v7 }
 0x91d   : > { %2140 = vtanh.f32 %v1474_v9 }
 0x923   : > { %v2141_v10 = vpop.eup %2140 }
 0x924   : > { %v1476_v12 = vadd.f32 1.0, %v2141_v10 }
 0x926   : > { %v1477_v13 = vmul.f32 %v1476_v12, %v1469_v11 }
 0x928   : > { %v1478_v14 = vpack.c.bf16 %v1477_v13, %v1477_v13 }
 0x92a   : > { %1555 = vmatmul.bf16.vlgmr.msra.gmra.mxu3 %v1478_v14 }
 0x9ad   : > { %v1556_v17 = vpop.f32.mrf.mxu3 }
 0x9ae   : > { %v1557_v18 = vadd.f32 %v2125_v15, %v1556_v17 }
 0x9b0   : > { %v1560_v19 = vadd.f32 %v1557_v18, %v2556_v31 }
 0x9b1   : > { %1565 = sbr.rel (%p2011_p8) target bundleno = 2755 (0xac3), region = 96 }
 0x9b2   : > { %1561 = vst.msk [vmem:[#allocation2] sm:$0x1f] %vm1162_vm4, %v1560_v19 }
 0x9b5   : > { %v1558_v20 = vpop.f32.mrf.mxu3 }
 0x9b6   : > { %v1568_v21 = vsel %vm1162_vm4, %v1560_v19, 0.0  ;;  %v2142_v36 = vld [vmem:[%s2681_s16] ss:$0 sm:$0xff] }
 0x9b7   : > { %1569 = vadd.xlane.f32.xlu0 %v1568_v21 }
 0xa2a   : > { %v1570_v22 = vpop.xlane.xlu0 %1569 }
 0xa2b   : > { %v1571_v23 = vmul.f32 %v1570_v22, %v2512_v16 }
 0xa2d   : > { %v1572_v24 = vsub.f32 %v1560_v19, %v1571_v23 }
 0xa2f   : > { %v1573_v25 = vmul.f32 %v1572_v24, %v1572_v24 }
 0xa31   : > { %v1574_v26 = vsel %vm1162_vm4, %v1573_v25, 0.0 }
 0xa32   : > { %1575 = vadd.xlane.f32.xlu0 %v1574_v26 }
 0xaa5   : > { %v1576_v27 = vpop.xlane.xlu0 %1575 }
 0xaa6   : > { %v1577_v28 = vmul.f32 %v1576_v27, %v2512_v16  ;;  %v2143_v16 = vld [vmem:[%s2682_s17] ss:$0 sm:$0xff] }
 0xaa8   : > { %v1578_v29 = vadd.f32 1e-06, %v1577_v28 }
 0xaaa   : > { %2144 = vrsqrt.f32 %v1578_v29  ;;  %vm1585_vm3 = vweird.f32 %v1578_v29 }
 0xab0   : > { %v2145_v30 = vpop.eup %2144 }
 0xab1   : > { %v1580_v31 = vmul.f32 %v2145_v30, %v1578_v29  ;;  %vm1586_vm2 = vweird.f32 %v2145_v30 }
 0xab2   : > { %vm1587_vm5 = vmor %vm1585_vm3, %vm1586_vm2 }
 0xab3   : > { %v1581_v32 = vmul.f32 %v2145_v30, %v1580_v31 }
 0xab5   : > { %v1582_v33 = vmul.f32 0.5, %v1581_v32 }
 0xab7   : > { %v1583_v34 = vsub.f32 1.5, %v1582_v33 }
 0xab9   : > { %v1584_v35 = vmul.f32 %v2145_v30, %v1583_v34 }
 0xabb   : > { %v1588_v37 = vsel %vm1587_vm5, %v2145_v30, %v1584_v35 }
 0xabc   : > { %v1589_v38 = vmul.f32 %v1588_v37, %v1572_v24 }
 0xabe   : > { %v1593_v39 = vmul.f32 %v2142_v36, %v1589_v38 }
 0xac0   : > { %v1597_v40 = vadd.f32 %v2143_v16, %v1593_v39 }
 0xac2   : > { %1598 = vst.msk [vmem:[%s2382_s4] sm:$0x1f] %vm1162_vm4, %v1597_v40 }
 0xac3 PF: > { %s2683_s21 = sld [smem:[#allocation6_spill]] }
 0xac4   : > { %s2684_s24 = sld [smem:[#allocation4_spill]] }
 0xac5   : > { %s2685_s25 = sld [smem:[#allocation5_spill]] }
 0xac6   : > { %s2686_s26 = sld [smem:[#allocation7_spill]] }
 0xac7   : > { %s2687_s27 = sld [smem:[#allocation8_spill]] }
 0xac9   : > { %s27_s28 = sadd.s32 1, %s2683_s21  }
 0xaca   : > { %p24_p9 = scmp.ge.s32.totalorder %s27_s28, 6  }
 0xacc   :  { %26 = sbr.rel (!%p24_p9) target bundleno = 10 (0xa), region = 164 }

</bundles_post_ra>
